<compile_context>
chip_gen: v5e
topology: v5e:2x2
jax: 0.10.0
libtpu: 0.0.40
codegen_flags: <defaults>
</compile_context>

<pallas_src>
import functools

import jax
import jax.numpy as jnp
from jax.experimental import pallas as pl
from jax.experimental.pallas import tpu as pltpu


_SINGLE_BLOCK_MAX_BYTES = 512 * 1024   # per-input fast-path threshold


def _round_up(x, m):
    return ((x + m - 1) // m) * m


def _vmem_config():
    """Return (scoped vmem limit, per-input per-buffer tile budget) for this chip."""
    scoped, budget = 32 * 1024 * 1024, 6 * 1024 * 1024       # safe on v7x (64 MiB phys)
    try:
        cap = pltpu.get_tpu_info().vmem_capacity_bytes
        if cap >= 128 * 1024 * 1024:                          # v5e / v6e
            scoped, budget = 64 * 1024 * 1024, 12 * 1024 * 1024
    except Exception:
        pass
    return scoped, budget


def _pick_tiles(B, D, itemsize, budget):
    """Pick (tb, td) batch/feature tile sizes from the actual input dtype."""
    row_align = 8 * max(1, 4 // itemsize)       # f32: 8 rows, bf16: 16, int8: 32
    row_bytes = D * itemsize
    if D % 128 == 0 and row_align * row_bytes > budget:
        # Very wide embedding: tile the feature axis too (D-axis grid).
        td = max(128, ((budget // (row_align * itemsize)) // 128) * 128)
        tb = row_align
    else:
        # TODO(synk): D % 128 != 0 with an extremely wide D still uses a
        # full-D row tile and may exceed the scoped VMEM limit.
        td = D
        tb = max(row_align,
                 ((budget // max(row_bytes, 1)) // row_align) * row_align)
    # Keep enough batch tiles (>= ~4) for pipelining / v7x megacore sharding.
    tb = min(tb, _round_up(B, row_align))
    if B >= 4 * row_align:
        tb = min(tb, max(row_align, _round_up(-(-B // 4), row_align)))
    return tb, td


def _single_block_kernel(i_ref, j_ref, o_ref, *, inv_count):
    # Whole (B, D) problem in one VMEM block; direct reduce to the scalar.
    d = i_ref[...].astype(jnp.float32) - j_ref[...].astype(jnp.float32)
    o_ref[...] = jnp.sum(d * d, axis=(0, 1), keepdims=True) * inv_count


def _tiled_kernel(i_ref, j_ref, o_ref, *, tb, td, B, D, fold_lanes):
    # i_ref, j_ref: (tb, td) VMEM tiles.
    # o_ref: (1, 8, 128) (or (1, 8, D) fallback) per-batch-tile accumulator,
    #        resident across the feature-chunk grid axis.
    b = pl.program_id(0)
    d_idx = pl.program_id(1)

    @pl.when(d_idx == 0)
    def _():
        o_ref[...] = jnp.zeros_like(o_ref)

    x = i_ref[...].astype(jnp.float32) - j_ref[...].astype(jnp.float32)
    sq = x * x

    # Mask ragged batch / feature edges. Cheap: the kernel is HBM-bound and
    # the VPU has large slack, so this never lands on the critical path.
    mask_rows = (B % tb) != 0
    mask_cols = (D % td) != 0
    if mask_rows or mask_cols:
        keep = None
        if mask_rows:
            rows = jax.lax.broadcasted_iota(jnp.int32, sq.shape, 0) + b * tb
            keep = rows < B
        if mask_cols:
            cols = jax.lax.broadcasted_iota(jnp.int32, sq.shape, 1) + d_idx * td
            col_keep = cols < D
            keep = col_keep if keep is None else jnp.logical_and(keep, col_keep)
        sq = jnp.where(keep, sq, 0.0)

    if fold_lanes:
        # Fold (tb, td) -> (8, 128): pure VPU vreg adds (no cross-lane op),
        # kills the wide partial writeback + big follow-up reduce.
        part = jnp.sum(sq.reshape(tb // 8, 8, td // 128, 128), axis=(0, 2))
        o_ref[...] += part.reshape(1, 8, 128)
    else:
        # Fallback for D % 128 != 0: lane-resident (8, D) partial.
        part = jnp.sum(sq.reshape(tb // 8, 8, td), axis=0)
        o_ref[...] += part.reshape(1, 8, td)


def contrastive_loss(emb_i, emb_j, label=None, temperature=0.5, *,
                     tb=None, td=None):
    # `label` and `temperature` are unused in the reference forward pass.
    del label, temperature
    B, D = emb_i.shape
    assert emb_j.shape == (B, D)
    itemsize = jnp.dtype(emb_i.dtype).itemsize
    inv_count = 1.0 / float(B * D)
    vmem_limit, budget = _vmem_config()
    row_align = 8 * max(1, 4 // itemsize)
    forced = (tb is not None) or (td is not None)

    if not forced and (B < row_align or B * D * itemsize <= _SINGLE_BLOCK_MAX_BYTES):
        # Single-block fast path: no grid loop, no pipeline overhead.
        out = pl.pallas_call(
            functools.partial(_single_block_kernel, inv_count=inv_count),
            out_shape=jax.ShapeDtypeStruct((1, 1), jnp.float32),
            grid_spec=pltpu.PrefetchScalarGridSpec(
                num_scalar_prefetch=0,
                grid=(1,),
                in_specs=[
                    pl.BlockSpec((B, D), lambda b: (0, 0)),
                    pl.BlockSpec((B, D), lambda b: (0, 0)),
                ],
                out_specs=pl.BlockSpec((1, 1), lambda b: (0, 0)),
            ),
            compiler_params=pltpu.CompilerParams(
                dimension_semantics=("arbitrary",),
                vmem_limit_bytes=vmem_limit,
            ),
            cost_estimate=pl.CostEstimate(
                flops=3 * B * D, transcendentals=0,
                bytes_accessed=2 * B * D * itemsize + 4),
        )(emb_i, emb_j)
        return out[0, 0]

    auto_tb, auto_td = _pick_tiles(B, D, itemsize, budget)
    tb = auto_tb if tb is None else int(tb)
    td = auto_td if td is None else int(td)
    tb = max(row_align, (tb // row_align) * row_align)
    if D % 128 == 0:
        td = min(D, max(128, (td // 128) * 128))
    else:
        td = D
    fold_lanes = (td % 128 == 0)
    lane = 128 if fold_lanes else td

    nb = pl.cdiv(B, tb)
    nd = pl.cdiv(D, td)

    partials = pl.pallas_call(
        functools.partial(_tiled_kernel, tb=tb, td=td, B=B, D=D,
                          fold_lanes=fold_lanes),
        out_shape=jax.ShapeDtypeStruct((nb, 8, lane), jnp.float32),
        grid_spec=pltpu.PrefetchScalarGridSpec(
            num_scalar_prefetch=0,
            grid=(nb, nd),
            in_specs=[
                pl.BlockSpec((tb, td), lambda b, d: (b, d)),
                pl.BlockSpec((tb, td), lambda b, d: (b, d)),
            ],
            out_specs=pl.BlockSpec((1, 8, lane), lambda b, d: (b, 0, 0)),
        ),
        compiler_params=pltpu.CompilerParams(
            # Each batch tile owns its output block, so the batch axis can
            # shard across the v7x TensorCores; the feature-chunk axis is the
            # (output-resident) reduction, kept innermost.
            dimension_semantics=("parallel", "arbitrary"),
            vmem_limit_bytes=vmem_limit,
        ),
        cost_estimate=pl.CostEstimate(
            flops=3 * B * D, transcendentals=0,
            bytes_accessed=2 * B * D * itemsize + nb * 8 * lane * 4),
    )(emb_i, emb_j)
    # Tiny final reduce over (nb, 8, lane) f32 partials outside the kernel.
    return jnp.sum(partials) * inv_count


if __name__ == "__main__":
    key = jax.random.PRNGKey(0)
    keys = jax.random.split(key, 8)

    def ref_loss(a, b):
        d = (a.astype(jnp.float32) - b.astype(jnp.float32)) ** 2
        return jnp.mean(jnp.mean(d, axis=1))

    # Case 1: small problem -> single-block fast path.
    B, D = 16, 128
    emb_i = jax.random.normal(keys[0], (B, D), dtype=jnp.float32)
    emb_j = jax.random.normal(keys[1], (B, D), dtype=jnp.float32)
    label = jax.random.bernoulli(keys[2], 0.5, (B,)).astype(jnp.float32)  # unused
    loss = jax.block_until_ready(contrastive_loss(emb_i, emb_j, label))
    ref = ref_loss(emb_i, emb_j)
    assert jnp.allclose(loss, ref, rtol=1e-5, atol=1e-6), (loss, ref)

    # Case 2: tiled path with ragged last batch tile (forced small tb).
    B2, D2 = 20, 128
    emb_i2 = jax.random.normal(keys[3], (B2, D2), dtype=jnp.float32)
    emb_j2 = jax.random.normal(keys[4], (B2, D2), dtype=jnp.float32)
    loss2 = jax.block_until_ready(contrastive_loss(emb_i2, emb_j2, None, tb=8))
    ref2 = ref_loss(emb_i2, emb_j2)
    assert jnp.allclose(loss2, ref2, rtol=1e-5, atol=1e-6), (loss2, ref2)

    # Case 3: D-axis grid with a ragged last feature chunk (forced tb/td).
    B3, D3 = 16, 384
    emb_i3 = jax.random.normal(keys[5], (B3, D3), dtype=jnp.float32)
    emb_j3 = jax.random.normal(keys[6], (B3, D3), dtype=jnp.float32)
    loss3 = jax.block_until_ready(contrastive_loss(emb_i3, emb_j3, None,
                                                   tb=8, td=256))
    ref3 = ref_loss(emb_i3, emb_j3)
    assert jnp.allclose(loss3, ref3, rtol=1e-5, atol=1e-6), (loss3, ref3)

    # Case 4: bf16 inputs, D-axis grid, ragged batch tile (dtype-aware path).
    B4, D4 = 20, 256
    emb_i4 = jax.random.normal(keys[7], (B4, D4), jnp.float32).astype(jnp.bfloat16)
    emb_j4 = jax.random.normal(keys[2], (B4, D4), jnp.float32).astype(jnp.bfloat16)
    loss4 = jax.block_until_ready(contrastive_loss(emb_i4, emb_j4, None,
                                                   tb=16, td=128))
    ref4 = ref_loss(emb_i4, emb_j4)
    assert jnp.allclose(loss4, ref4, rtol=1e-4, atol=1e-5), (loss4, ref4)

    print("KERNEL_OK")
</pallas_src>

<mosaic_0001>
module attributes {stable_mosaic.version = 11 : i64} {
  func.func @_single_block_kernel(%arg0: i32, %arg1: memref<16x128xf32, #tpu.memory_space<vmem>>, %arg2: memref<16x128xf32, #tpu.memory_space<vmem>>, %arg3: memref<1x1xf32, #tpu.memory_space<vmem>>) attributes {dimension_semantics = [#tpu.dimension_semantics<arbitrary>], iteration_bounds = array<i64: 1>, scalar_prefetch = 0 : i64, scratch_operands = 0 : i64, tpu.core_type = #tpu.core_type<tc>, window_params = [{pipeline_mode = #tpu.pipeline_mode<synchronous>, transform_indices = @transform_0, window_bounds = array<i64: 16, 128>}, {pipeline_mode = #tpu.pipeline_mode<synchronous>, transform_indices = @transform_1, window_bounds = array<i64: 16, 128>}, {pipeline_mode = #tpu.pipeline_mode<synchronous>, transform_indices = @transform_2, window_bounds = array<i64: 1, 1>}]} {
    %c0 = arith.constant 0 : index
    %c0_0 = arith.constant 0 : index
    %0 = vector.load %arg1[%c0, %c0_0] : memref<16x128xf32, #tpu.memory_space<vmem>>, vector<16x128xf32>
    %c0_1 = arith.constant 0 : index
    %c0_2 = arith.constant 0 : index
    %1 = vector.load %arg2[%c0_1, %c0_2] : memref<16x128xf32, #tpu.memory_space<vmem>>, vector<16x128xf32>
    %2 = arith.subf %0, %1 : vector<16x128xf32>
    %3 = arith.mulf %2, %2 : vector<16x128xf32>
    %4 = vector.shape_cast %3 : vector<16x128xf32> to vector<1x16x128xf32>
    %cst = arith.constant dense<0.000000e+00> : vector<1xf32>
    %5 = vector.multi_reduction <add>, %4, %cst [1, 2] : vector<1x16x128xf32> to vector<1xf32>
    %6 = vector.shape_cast %5 : vector<1xf32> to vector<1x1x1xf32>
    %7 = vector.extract %6[0, 0, 0] : f32 from vector<1x1x1xf32>
    %8 = vector.broadcast %7 : f32 to vector<1x1xf32>
    %cst_3 = arith.constant 4.8828125E-4 : f32
    %9 = vector.broadcast %cst_3 : f32 to vector<1x1xf32>
    %10 = arith.mulf %8, %9 : vector<1x1xf32>
    %c0_4 = arith.constant 0 : index
    %c0_5 = arith.constant 0 : index
    %11 = vector.load %arg3[%c0_4, %c0_5] : memref<1x1xf32, #tpu.memory_space<vmem>>, vector<1x1xf32>
    tpu.vector_store %arg3[%c0_4, %c0_5], %10 {strides = array<i32>} : memref<1x1xf32, #tpu.memory_space<vmem>>, vector<1x1xf32>,
    return
  }
  func.func @transform_0(%arg0: i32) -> (i32, i32) {
    %c0_i32 = arith.constant 0 : i32
    %c0_i32_0 = arith.constant 0 : i32
    %c0_i32_1 = arith.constant 0 : i32
    return %c0_i32, %c0_i32_0 : i32, i32
  }
  func.func @transform_1(%arg0: i32) -> (i32, i32) {
    %c0_i32 = arith.constant 0 : i32
    %c0_i32_0 = arith.constant 0 : i32
    %c0_i32_1 = arith.constant 0 : i32
    return %c0_i32, %c0_i32_0 : i32, i32
  }
  func.func @transform_2(%arg0: i32) -> (i32, i32) {
    %c0_i32 = arith.constant 0 : i32
    %c0_i32_0 = arith.constant 0 : i32
    %c0_i32_1 = arith.constant 0 : i32
    return %c0_i32, %c0_i32_0 : i32, i32
  }
}

</mosaic_0001>

<bundles_post_ra>
// kernel: tpu_custom_call.1
= control target key start
LH: loop header
LB: loop body
LE: loop exit
PB: predicated region body
PF: predicated region fallthrough
CT: control target
= control target key end

     0   :  { %7 = vsyncpa [#allocation3], 0  ;;  %s198_s0 = inlined_call_operand.hbm [shape: f32[16,128], index: 0, kind: input, shape index: {}]   ;;  %s199_s1 = inlined_call_operand.hbm [shape: f32[16,128], index: 1, kind: input, shape index: {}]   ;;  %s200_s2 = inlined_call_operand.hbm [shape: f32[1,1], index: 2, kind: output, shape index: {}]  }
   0x1   :  { %8 = vsyncpa [#allocation6], 0 }
   0x2   :  { %9 = vsyncpa [#allocation4], 0  ;;  %s14_s11 = sshll.u32 %s198_s0, 4  ;;  %s169_s12 = smov [#allocation2]   ;;  %s15_s11 = int_to_ptr.hbm [resolvable:$true] %s14_s11 }
   0x3   :  { %s16_s13 = sshll.u32 %s169_s12, 4  ;;  %s27_s16 = sshll.u32 %s199_s1, 4  ;;  %s17_s13 = int_to_ptr.vmem [resolvable:$true] %s16_s13  ;;  %s28_s16 = int_to_ptr.hbm [resolvable:$true] %s27_s16 }
   0x4   :  { %s170_s17 = smov 128   ;;  %s171_s18 = smov 8  }
   0x5   :  { %22 = dma.hbm_to_vmem [thread:$0]  %s15_s11, 256, %s17_s13, [#allocation3], %s170_s17, %s170_s17, %s171_s18  }
   0x6   :  { %s172_s19 = smov [#allocation5]  }
   0x7   :  { %s29_s20 = sshll.u32 %s172_s19, 4  ;;  %s30_s20 = int_to_ptr.vmem [resolvable:$true] %s29_s20 }
   0x8   :  { %35 = dma.hbm_to_vmem [thread:$0]  %s28_s16, 256, %s30_s20, [#allocation6], %s170_s17, %s170_s17, %s171_s18  }
   0x9   :  { %163 = dma.done.wait [#allocation3], 256  }
   0xa   :  { %164 = vsyncadd [#allocation3], 4294967040 }
   0xb   :  { %165 = dma.done.wait [#allocation6], 256  }
   0xc   :  { %166 = vsyncadd [#allocation6], 4294967040  ;;  %v44_v0 = vld [vmem:[#allocation2] sm:$0xff]  ;;  %v45_v1 = vld [vmem:[#allocation2 + $0x8] sm:$0xff]  ;;  %s173_s0 = smov [#allocation7]   ;;  %s73_s23 = sshll.u32 %s200_s2, 4  ;;  %s74_s23 = int_to_ptr.hbm [resolvable:$true] %s73_s23 }
   0xd   :  { %v46_v2 = vld [vmem:[#allocation5] sm:$0xff]  ;;  %v47_v3 = vld [vmem:[#allocation5 + $0x8] sm:$0xff]  ;;  %s71_s1 = sshll.u32 %s173_s0, 4  ;;  %vm64_vm0 = vcmask 0   ;;  %s72_s1 = int_to_ptr.vmem [resolvable:$true] %s71_s1 }
   0xe   :  { %v48_v4 = vsub.f32 %v44_v0, %v46_v2  ;;  %v49_v5 = vsub.f32 %v45_v1, %v47_v3 }
  0x10   :  { %v50_v6 = vmul.f32 %v48_v4, %v48_v4  ;;  %v51_v7 = vmul.f32 %v49_v5, %v49_v5 }
  0x12   :  { %v52_v8 = vadd.f32 %v51_v7, %v50_v6 }
  0x14   :  { %53 = vadd.xlane.f32.xlu0 %v52_v8 }
  0x87   :  { %v54_v9 = vpop.xlane.xlu0 %53 }
  0x88   :  { %v55_v10 = vrot.slane %v54_v9, 4 }
  0x8a   :  { %v56_v11 = vadd.f32 %v55_v10, %v54_v9 }
  0x8c   :  { %v57_v12 = vrot.slane %v56_v11, 2 }
  0x8e   :  { %v58_v13 = vadd.f32 %v57_v12, %v56_v11 }
  0x90   :  { %v59_v14 = vrot.slane %v58_v13, 1 }
  0x92   :  { %v60_v15 = vadd.f32 %v59_v14, %v58_v13 }
  0x94   :  { %84 = vpush %v60_v15 }
  0xc5   :  { %s85_s24 = spop %84 }
  0xc6   :  { %v62_v16 = vstv %s85_s24 }
  0xc7   :  { %v63_v17 = vmul.f32 0.00048828125, %v62_v16 }
  0xc9   :  { %65 = vst.msk [vmem:[#allocation7] sm:$0x1] %vm64_vm0, %v63_v17 }
  0xca   :  { %76 = dma.vmem_to_hbm [thread:$0]  %s72_s1, 16, %s74_s23, [#allocation4]  }
  0xcb   :  { %167 = dma.done.wait [#allocation4], 16  }
  0xcc   :  { %168 = vsyncadd [#allocation4], 4294967280 }
  0xcd   :  { %81 = vsyncpa [#allocation3], 1 }
  0xce   :  { %82 = vsyncpa [#allocation6], 1 }
  0xcf   :  { %83 = vsyncpa [#allocation4], 1 }

</bundles_post_ra>
